<compile_context>
chip_gen: v7x
topology: tpu7x:2x2x1
jax: 0.10.0
libtpu: 0.0.40
codegen_flags: <defaults>
</compile_context>

<pallas_src>
import functools
import math

import jax
import jax.numpy as jnp
from jax.experimental import pallas as pl
from jax.experimental.pallas import tpu as pltpu


# ----------------------------------------------------------------------------
# In-kernel helpers
# ----------------------------------------------------------------------------
def _layernorm(x, gamma, beta, eps=1e-5):
    mu = jnp.mean(x, axis=-1, keepdims=True)
    var = jnp.mean((x - mu) ** 2, axis=-1, keepdims=True)
    return (x - mu) * jax.lax.rsqrt(var + eps) * gamma + beta


# ----------------------------------------------------------------------------
# Kernel 1: patch embed + class token + positional embedding + ln_pre (fused)
# ----------------------------------------------------------------------------
def embed_kernel(patches_ref, w_ref, cls_ref, pos_ref, g_ref, b_ref, o_ref):
    # patches: [1, T_pad, K] (row 0 and padded rows are zero), w: [K, D] bf16
    emb = jnp.dot(patches_ref[0].astype(w_ref.dtype), w_ref[...],
                  preferred_element_type=jnp.float32)            # [T_pad, D]
    t_pad = emb.shape[0]
    is_cls = jax.lax.broadcasted_iota(jnp.int32, (t_pad, 1), 0) == 0
    x = emb + jnp.where(is_cls, cls_ref[...], 0.0) + pos_ref[...]
    o_ref[0] = _layernorm(x, g_ref[...], b_ref[...])


# ----------------------------------------------------------------------------
# Kernel 2: ALL residual attention blocks, grid = (batch, layer)
# ----------------------------------------------------------------------------
def blocks_kernel(x_ref, g1_ref, b1_ref, wqkv_ref, bqkv_ref, wo_ref, bo_ref,
                  g2_ref, b2_ref, w1_ref, bm1_ref, w2_ref, bm2_ref,
                  o_ref, attn_scr, *, num_heads, t_real):
    layer = pl.program_id(1)

    # Output block index depends only on batch -> it stays resident in VMEM
    # across the layer axis and carries the residual stream.
    @pl.when(layer == 0)
    def _():
        o_ref[...] = x_ref[...]

    x = o_ref[0]                                   # [T_pad, D] f32
    t_pad, d = x.shape
    dh = d // num_heads

    # --- multi-head self attention ------------------------------------------
    h = _layernorm(x, g1_ref[0], b1_ref[0])
    # 1/sqrt(dh) is already folded into the q columns of wqkv/bqkv host-side.
    qkv = jnp.dot(h.astype(wqkv_ref.dtype), wqkv_ref[0],
                  preferred_element_type=jnp.float32) + bqkv_ref[0]
    q, k, v = qkv[:, :d], qkv[:, d:2 * d], qkv[:, 2 * d:]

    if t_pad > t_real:   # mask padded key columns (static condition)
        kmask = jax.lax.broadcasted_iota(jnp.int32, (t_pad, t_pad), 1) < t_real
    else:
        kmask = None

    for hd in range(num_heads):                    # static, unrolled
        sl = slice(hd * dh, (hd + 1) * dh)
        qh = q[:, sl].astype(jnp.bfloat16)
        kh = k[:, sl].astype(jnp.bfloat16)
        s = jnp.dot(qh, kh.T, preferred_element_type=jnp.float32)
        if kmask is not None:
            s = jnp.where(kmask, s, -1e30)
        s = s - jnp.max(s, axis=-1, keepdims=True)
        p = jnp.exp(s)
        p = p * pl.reciprocal(jnp.sum(p, axis=-1, keepdims=True), approx=True)
        out_h = jnp.dot(p.astype(jnp.bfloat16), v[:, sl].astype(jnp.bfloat16),
                        preferred_element_type=jnp.float32)
        attn_scr[:, sl] = out_h                    # no concat: scratch slice

    x = x + jnp.dot(attn_scr[...].astype(wo_ref.dtype), wo_ref[0],
                    preferred_element_type=jnp.float32) + bo_ref[0]

    # --- MLP (QuickGELU, as in CLIP) ------------------------------------------
    h2 = _layernorm(x, g2_ref[0], b2_ref[0])
    m = jnp.dot(h2.astype(w1_ref.dtype), w1_ref[0],
                preferred_element_type=jnp.float32) + bm1_ref[0]
    m = m * jax.nn.sigmoid(1.702 * m)
    m = jnp.dot(m.astype(w2_ref.dtype), w2_ref[0],
                preferred_element_type=jnp.float32) + bm2_ref[0]
    o_ref[0] = x + m


# ----------------------------------------------------------------------------
# Kernel 3: ln_post + projection of the class token
# ----------------------------------------------------------------------------
def head_kernel(cls_ref, g_ref, b_ref, proj_ref, o_ref):
    h = _layernorm(cls_ref[...], g_ref[...], b_ref[...])
    o_ref[...] = jnp.dot(h.astype(proj_ref.dtype), proj_ref[...],
                         preferred_element_type=jnp.float32)


# ----------------------------------------------------------------------------
# Parameter init (deterministic, synthetic — no checkpoint load)
# ----------------------------------------------------------------------------
def init_params(key, *, in_ch, patch, width, heads, layers, mlp_dim, embed_dim,
                num_tokens):
    del heads

    def nrm(k, shape, scale=0.02):
        return scale * jax.random.normal(k, shape, dtype=jnp.float32)

    keys = iter(jax.random.split(key, 8 + 8 * layers))
    params = {
        "conv_w": nrm(next(keys), (width, in_ch, patch, patch)),
        "class_embedding": nrm(next(keys), (width,)),
        "pos_embedding": nrm(next(keys), (num_tokens, width)),
        "ln_pre_g": jnp.ones((1, width), jnp.float32),
        "ln_pre_b": jnp.zeros((1, width), jnp.float32),
        "ln_post_g": jnp.ones((1, width), jnp.float32),
        "ln_post_b": jnp.zeros((1, width), jnp.float32),
        "proj": nrm(next(keys), (width, embed_dim)),
        "blocks": [],
    }
    for _ in range(layers):
        params["blocks"].append({
            "g1": jnp.ones((1, width), jnp.float32),
            "b1": jnp.zeros((1, width), jnp.float32),
            "wqkv": nrm(next(keys), (width, 3 * width)),
            "bqkv": jnp.zeros((1, 3 * width), jnp.float32),
            "wo": nrm(next(keys), (width, width)),
            "bo": jnp.zeros((1, width), jnp.float32),
            "g2": jnp.ones((1, width), jnp.float32),
            "b2": jnp.zeros((1, width), jnp.float32),
            "w1": nrm(next(keys), (width, mlp_dim)),
            "bm1": jnp.zeros((1, mlp_dim), jnp.float32),
            "w2": nrm(next(keys), (mlp_dim, width)),
            "bm2": jnp.zeros((1, width), jnp.float32),
        })
    return params


# ----------------------------------------------------------------------------
# Forward (= VisualWrapper.forward): returns image_features
# ----------------------------------------------------------------------------
def visual_wrapper_forward(x, params, *, patch, num_heads, features_list,
                           dpam_layer):
    # features_list / dpam_layer only affect the (unreturned) patch_features /
    # V-V attention branch.  TODO(synk): not materialized here.
    del features_list, dpam_layer

    n, c, h, w = x.shape
    gh, gw = h // patch, w // patch
    p_cnt = gh * gw
    width = params["class_embedding"].shape[-1]
    t = p_cnt + 1
    t_pad = ((t + 7) // 8) * 8               # sublane-align every [T, *] tile
    embed_dim = params["proj"].shape[-1]
    layers = len(params["blocks"])
    dh = width // num_heads
    scale = 1.0 / math.sqrt(dh)

    # --- glue: patch extraction + weight packing (bf16, layer-stacked) -------
    patches = (x.reshape(n, c, gh, patch, gw, patch)
                 .transpose(0, 2, 4, 1, 3, 5)
                 .reshape(n, p_cnt, c * patch * patch))
    # Row 0 reserved for the class token, trailing rows are padding -> zero.
    patches = jnp.pad(patches, ((0, 0), (1, t_pad - 1 - p_cnt), (0, 0)))
    k_dim = c * patch * patch
    w_conv = params["conv_w"].reshape(width, k_dim).T.astype(jnp.bfloat16)
    cls = params["class_embedding"].reshape(1, width)
    pos = jnp.pad(params["pos_embedding"], ((0, t_pad - t), (0, 0)))

    def stack(name):
        return jnp.stack([blk[name] for blk in params["blocks"]], axis=0)

    # Fold the 1/sqrt(dh) attention scale into the q columns of wqkv / bqkv.
    wqkv = stack("wqkv").at[:, :, :width].multiply(scale).astype(jnp.bfloat16)
    bqkv = stack("bqkv").at[:, :, :width].multiply(scale)
    wo = stack("wo").astype(jnp.bfloat16)
    w1 = stack("w1").astype(jnp.bfloat16)
    w2 = stack("w2").astype(jnp.bfloat16)
    g1, b1 = stack("g1"), stack("b1")
    bo = stack("bo")
    g2, b2 = stack("g2"), stack("b2")
    bm1, bm2 = stack("bm1"), stack("bm2")

    # --- fused patch-embed + cls token + pos embedding + ln_pre --------------
    tokens = pl.pallas_call(
        embed_kernel,
        grid=(n,),
        in_specs=[
            pl.BlockSpec((1, t_pad, k_dim), lambda b: (b, 0, 0)),
            pl.BlockSpec((k_dim, width), lambda b: (0, 0)),
            pl.BlockSpec((1, width), lambda b: (0, 0)),
            pl.BlockSpec((t_pad, width), lambda b: (0, 0)),
            pl.BlockSpec((1, width), lambda b: (0, 0)),
            pl.BlockSpec((1, width), lambda b: (0, 0)),
        ],
        out_specs=pl.BlockSpec((1, t_pad, width), lambda b: (b, 0, 0)),
        out_shape=jax.ShapeDtypeStruct((n, t_pad, width), jnp.float32),
        compiler_params=pltpu.CompilerParams(dimension_semantics=("parallel",)),
    )(patches, w_conv, cls, pos, params["ln_pre_g"], params["ln_pre_b"])

    # --- all transformer blocks in one pallas_call, grid = (batch, layer) ----
    stacked = [g1, b1, wqkv, bqkv, wo, bo, g2, b2, w1, bm1, w2, bm2]
    in_specs = [pl.BlockSpec((1, t_pad, width), lambda b, l: (b, 0, 0))]
    in_specs += [pl.BlockSpec((1,) + a.shape[1:], lambda b, l: (l, 0, 0))
                 for a in stacked]

    tokens = pl.pallas_call(
        functools.partial(blocks_kernel, num_heads=num_heads, t_real=t),
        grid=(n, layers),
        in_specs=in_specs,
        out_specs=pl.BlockSpec((1, t_pad, width), lambda b, l: (b, 0, 0)),
        out_shape=jax.ShapeDtypeStruct((n, t_pad, width), jnp.float32),
        scratch_shapes=[pltpu.VMEM((t_pad, width), jnp.float32)],
        compiler_params=pltpu.CompilerParams(
            dimension_semantics=("parallel", "arbitrary")),
    )(tokens, *stacked)

    # --- ln_post + projection of class token (image_features) ----------------
    cls_tok = tokens[:, 0, :]                               # [N, D]
    proj = params["proj"].astype(jnp.bfloat16)
    image_features = pl.pallas_call(
        head_kernel,
        out_shape=jax.ShapeDtypeStruct((n, embed_dim), jnp.float32),
    )(cls_tok, params["ln_post_g"], params["ln_post_b"], proj)

    # VisualWrapper returns only image_features (grad flags have no compute).
    return image_features


# ----------------------------------------------------------------------------
if __name__ == "__main__":
    # Small synthetic configuration consistent with the ViT forward.
    N, C, H, W = 2, 3, 16, 16
    PATCH = 8
    WIDTH = 32
    HEADS = 4
    LAYERS = 2
    MLP = 4 * WIDTH
    EMBED = 16
    NUM_TOKENS = (H // PATCH) * (W // PATCH) + 1
    FEATURES_LIST = [1, 2]
    DPAM_LAYER = 2

    key = jax.random.PRNGKey(0)
    k_params, k_x = jax.random.split(key)
    params = init_params(k_params, in_ch=C, patch=PATCH, width=WIDTH,
                         heads=HEADS, layers=LAYERS, mlp_dim=MLP,
                         embed_dim=EMBED, num_tokens=NUM_TOKENS)
    x = jax.random.normal(k_x, (N, C, H, W), dtype=jnp.float32)

    image_features = visual_wrapper_forward(
        x, params, patch=PATCH, num_heads=HEADS,
        features_list=FEATURES_LIST, dpam_layer=DPAM_LAYER)
    image_features = jax.block_until_ready(image_features)

    assert image_features.shape == (N, EMBED)
    assert bool(jnp.all(jnp.isfinite(image_features)))
    print("KERNEL_OK")
</pallas_src>

<mosaic_0001>
module attributes {stable_mosaic.version = 11 : i64} {
  func.func @embed_kernel(%arg0: i32, %arg1: memref<1x8x192xf32, #tpu.memory_space<vmem>>, %arg2: memref<192x32xbf16, #tpu.memory_space<vmem>>, %arg3: memref<1x32xf32, #tpu.memory_space<vmem>>, %arg4: memref<8x32xf32, #tpu.memory_space<vmem>>, %arg5: memref<1x32xf32, #tpu.memory_space<vmem>>, %arg6: memref<1x32xf32, #tpu.memory_space<vmem>>, %arg7: memref<1x8x32xf32, #tpu.memory_space<vmem>>) attributes {dimension_semantics = [#tpu.dimension_semantics<parallel>], iteration_bounds = array<i64: 2>, scalar_prefetch = 0 : i64, scratch_operands = 0 : i64, tpu.core_type = #tpu.core_type<tc>, window_params = [{transform_indices = @transform_0, window_bounds = array<i64: 1, 8, 192>}, {pipeline_mode = #tpu.pipeline_mode<synchronous>, transform_indices = @transform_1, window_bounds = array<i64: 192, 32>}, {pipeline_mode = #tpu.pipeline_mode<synchronous>, transform_indices = @transform_2, window_bounds = array<i64: 1, 32>}, {pipeline_mode = #tpu.pipeline_mode<synchronous>, transform_indices = @transform_3, window_bounds = array<i64: 8, 32>}, {pipeline_mode = #tpu.pipeline_mode<synchronous>, transform_indices = @transform_4, window_bounds = array<i64: 1, 32>}, {pipeline_mode = #tpu.pipeline_mode<synchronous>, transform_indices = @transform_5, window_bounds = array<i64: 1, 32>}, {transform_indices = @transform_6, window_bounds = array<i64: 1, 8, 32>}]} {
    %c0 = arith.constant 0 : index
    %c0_0 = arith.constant 0 : index
    %c0_1 = arith.constant 0 : index
    %0 = vector.load %arg1[%c0, %c0_0, %c0_1] : memref<1x8x192xf32, #tpu.memory_space<vmem>>, vector<1x8x192xf32>
    %1 = vector.shape_cast %0 : vector<1x8x192xf32> to vector<8x192xf32>
    %2 = arith.truncf %1 : vector<8x192xf32> to vector<8x192xbf16>
    %c0_2 = arith.constant 0 : index
    %c0_3 = arith.constant 0 : index
    %3 = vector.load %arg2[%c0_2, %c0_3] : memref<192x32xbf16, #tpu.memory_space<vmem>>, vector<192x32xbf16>
    %cst = arith.constant dense<0.000000e+00> : vector<8x32xf32>
    %4 = tpu.matmul %2, %3, %cst {dimension_numbers = #tpu.dot_dimension_numbers<[1], [0], [0], [1], [0, 0, 1, 1], [], []>} : vector<8x192xbf16>, vector<192x32xbf16>, vector<8x32xf32> -> vector<8x32xf32>
    %5 = tpu.iota {dimensions = array<i32: 0>} : vector<8x1xi32>
    %c0_i32 = arith.constant 0 : i32
    %6 = vector.broadcast %c0_i32 : i32 to vector<8x1xi32>
    %7 = arith.cmpi eq, %5, %6 : vector<8x1xi32>
    %c0_4 = arith.constant 0 : index
    %c0_5 = arith.constant 0 : index
    %8 = vector.load %arg3[%c0_4, %c0_5] : memref<1x32xf32, #tpu.memory_space<vmem>>, vector<1x32xf32>
    %cst_6 = arith.constant 0.000000e+00 : f32
    %9 = vector.shape_cast %7 : vector<8x1xi1> to vector<8x1xi1>
    %10 = vector.broadcast %9 : vector<8x1xi1> to vector<8x32xi1>
    %11 = vector.shape_cast %8 : vector<1x32xf32> to vector<1x32xf32>
    %12 = vector.broadcast %11 : vector<1x32xf32> to vector<8x32xf32>
    %13 = vector.broadcast %cst_6 : f32 to vector<8x32xf32>
    %14 = arith.select %10, %12, %13 : vector<8x32xi1>, vector<8x32xf32>
    %15 = arith.addf %4, %14 : vector<8x32xf32>
    %c0_7 = arith.constant 0 : index
    %c0_8 = arith.constant 0 : index
    %16 = vector.load %arg4[%c0_7, %c0_8] : memref<8x32xf32, #tpu.memory_space<vmem>>, vector<8x32xf32>
    %17 = arith.addf %15, %16 : vector<8x32xf32>
    %c0_9 = arith.constant 0 : index
    %c0_10 = arith.constant 0 : index
    %18 = vector.load %arg5[%c0_9, %c0_10] : memref<1x32xf32, #tpu.memory_space<vmem>>, vector<1x32xf32>
    %c0_11 = arith.constant 0 : index
    %c0_12 = arith.constant 0 : index
    %19 = vector.load %arg6[%c0_11, %c0_12] : memref<1x32xf32, #tpu.memory_space<vmem>>, vector<1x32xf32>
    %cst_13 = arith.constant dense<0.000000e+00> : vector<8xf32>
    %20 = vector.multi_reduction <add>, %17, %cst_13 [1] : vector<8x32xf32> to vector<8xf32>
    %21 = vector.shape_cast %20 : vector<8xf32> to vector<8x1xf32>
    %cst_14 = arith.constant 3.200000e+01 : f32
    %22 = vector.broadcast %cst_14 : f32 to vector<8x1xf32>
    %23 = arith.divf %21, %22 : vector<8x1xf32>
    %24 = vector.broadcast %23 : vector<8x1xf32> to vector<8x32xf32>
    %25 = arith.subf %17, %24 : vector<8x32xf32>
    %26 = arith.mulf %25, %25 : vector<8x32xf32>
    %cst_15 = arith.constant dense<0.000000e+00> : vector<8xf32>
    %27 = vector.multi_reduction <add>, %26, %cst_15 [1] : vector<8x32xf32> to vector<8xf32>
    %28 = vector.shape_cast %27 : vector<8xf32> to vector<8x1xf32>
    %cst_16 = arith.constant 3.200000e+01 : f32
    %29 = vector.broadcast %cst_16 : f32 to vector<8x1xf32>
    %30 = arith.divf %28, %29 : vector<8x1xf32>
    %31 = vector.broadcast %23 : vector<8x1xf32> to vector<8x32xf32>
    %32 = arith.subf %17, %31 : vector<8x32xf32>
    %cst_17 = arith.constant 9.99999974E-6 : f32
    %33 = vector.broadcast %cst_17 : f32 to vector<8x1xf32>
    %34 = arith.addf %30, %33 : vector<8x1xf32>
    %35 = math.rsqrt %34 : vector<8x1xf32>
    %36 = vector.broadcast %35 : vector<8x1xf32> to vector<8x32xf32>
    %37 = arith.mulf %32, %36 : vector<8x32xf32>
    %38 = vector.broadcast %18 : vector<1x32xf32> to vector<8x32xf32>
    %39 = arith.mulf %37, %38 : vector<8x32xf32>
    %40 = vector.broadcast %19 : vector<1x32xf32> to vector<8x32xf32>
    %41 = arith.addf %39, %40 : vector<8x32xf32>
    %c0_18 = arith.constant 0 : index
    %c0_19 = arith.constant 0 : index
    %c0_20 = arith.constant 0 : index
    %42 = vector.load %arg7[%c0_18, %c0_19, %c0_20] : memref<1x8x32xf32, #tpu.memory_space<vmem>>, vector<1x8x32xf32>
    %43 = vector.shape_cast %42 : vector<1x8x32xf32> to vector<8x32xf32>
    %44 = vector.shape_cast %41 : vector<8x32xf32> to vector<1x8x32xf32>
    tpu.vector_store %arg7[%c0_18, %c0_19, %c0_20], %44 {strides = array<i32>} : memref<1x8x32xf32, #tpu.memory_space<vmem>>, vector<1x8x32xf32>,
    return
  }
  func.func @transform_0(%arg0: i32) -> (i32, i32, i32) {
    %c0_i32 = arith.constant 0 : i32
    %c0_i32_0 = arith.constant 0 : i32
    %c0_i32_1 = arith.constant 0 : i32
    return %arg0, %c0_i32, %c0_i32_0 : i32, i32, i32
  }
  func.func @transform_1(%arg0: i32) -> (i32, i32) {
    %c0_i32 = arith.constant 0 : i32
    %c0_i32_0 = arith.constant 0 : i32
    %c0_i32_1 = arith.constant 0 : i32
    return %c0_i32, %c0_i32_0 : i32, i32
  }
  func.func @transform_2(%arg0: i32) -> (i32, i32) {
    %c0_i32 = arith.constant 0 : i32
    %c0_i32_0 = arith.constant 0 : i32
    %c0_i32_1 = arith.constant 0 : i32
    return %c0_i32, %c0_i32_0 : i32, i32
  }
  func.func @transform_3(%arg0: i32) -> (i32, i32) {
    %c0_i32 = arith.constant 0 : i32
    %c0_i32_0 = arith.constant 0 : i32
    %c0_i32_1 = arith.constant 0 : i32
    return %c0_i32, %c0_i32_0 : i32, i32
  }
  func.func @transform_4(%arg0: i32) -> (i32, i32) {
    %c0_i32 = arith.constant 0 : i32
    %c0_i32_0 = arith.constant 0 : i32
    %c0_i32_1 = arith.constant 0 : i32
    return %c0_i32, %c0_i32_0 : i32, i32
  }
  func.func @transform_5(%arg0: i32) -> (i32, i32) {
    %c0_i32 = arith.constant 0 : i32
    %c0_i32_0 = arith.constant 0 : i32
    %c0_i32_1 = arith.constant 0 : i32
    return %c0_i32, %c0_i32_0 : i32, i32
  }
  func.func @transform_6(%arg0: i32) -> (i32, i32, i32) {
    %c0_i32 = arith.constant 0 : i32
    %c0_i32_0 = arith.constant 0 : i32
    %c0_i32_1 = arith.constant 0 : i32
    return %arg0, %c0_i32, %c0_i32_0 : i32, i32, i32
  }
}

</mosaic_0001>

<bundles_post_ra>
// kernel: tpu_custom_call.1
= control target key start
LH: loop header
LB: loop body
LE: loop exit
PB: predicated region body
PF: predicated region fallthrough
CT: control target
= control target key end

     0   :  { %11 = vsyncpa [#allocation3], 0  ;;  %s853_s0 = inlined_call_operand.vmem [shape: f32[2,8,192], index: 0, kind: input, shape index: {}]   ;;  %s854_s1 = inlined_call_operand.vmem [shape: bf16[192,32], index: 1, kind: input, shape index: {}]   ;;  %s855_s2 = inlined_call_operand.vmem [shape: f32[1,32], index: 2, kind: input, shape index: {}]   ;;  %s856_s3 = inlined_call_operand.vmem [shape: f32[8,32], index: 3, kind: input, shape index: {}]   ;;  %s857_s4 = inlined_call_operand.vmem [shape: f32[1,32], index: 4, kind: input, shape index: {}]   ;;  %s858_s5 = inlined_call_operand.vmem [shape: f32[1,32], index: 5, kind: input, shape index: {}]   ;;  %s859_s6 = inlined_call_operand.hbm [shape: f32[2,8,32], index: 6, kind: output, shape index: {}]  }
   0x1   :  { %13 = vsyncpa [#allocation3 + $0x1], 0  ;;  %s698_s21 = smov 0   ;;  %s700_s22 = smov 0  }
   0x2   :  { %s702_s23 = smov 0   ;;  %s704_s24 = smov 0  }
   0x3 LB: > { %s719_s25 = sadd.s32 4294967295, %s659_s24   ;;  %s515_s26 = sadd.s32 4294967294, %s659_s24   ;;  %s659_s24 = sphi %s704_s24, %s865_s24   ;;  %s655_s23 = sphi %s702_s23, %s864_s23   ;;  %s651_s22 = sphi %s700_s22, %s863_s22   ;;  %s647_s21 = sphi %s698_s21, %s862_s21  }
   0x4   : > { %s723_s27 = sadd.s32 1, %s659_s24   ;;  %s157_s28 = sadd.s32 1, %s655_s23 }
   0x5   : > { %s154_s29 = ssub.s32 %s659_s24, %s723_s27  ;;  %p167_p0 = scmp.ne.s32.totalorder %s655_s23, %s651_s22 }
   0x6   : > { %p155_p1 = scmp.eq.s32.totalorder %s154_s29, 0  ;;  %p168_p2 = scmp.eq.s32.totalorder %s719_s25, 1 }
   0x7   : > { %p173_p3 = scmp.ne.s32.totalorder %s651_s22, %s647_s21  ;;  %p174_p4 = scmp.eq.s32.totalorder %s515_s26, 1 }
   0x8   : > { %s734_s30 = scalar_select %p155_p1, %s655_s23, %s157_s28  }
   0x9   : > { %p736_p5 = por %p168_p2, %p167_p0  ;;  %p740_p6 = por %p174_p4, %p173_p3 }
   0xa   : > { %p518_p7 = scmp.ge.s32.totalorder %s659_s24, 1  ;;  %p215_p8 = scmp.lt.s32.totalorder %s659_s24, 3 }
   0xc   : > { %p216_p9 = pnand %p518_p7, %p215_p8 }
   0xd   : > { %v583_v0 = vld [vmem:[%s854_s1] sm:$0xff] (!%p216_p9)   ;;  %v661_v1 = vmov (!%p216_p9), 0   ;;  %p245_p10 = scmp.lt.s32.totalorder (!%p216_p9), %s719_s25, 1  ;;  %v584_v2 = vld [vmem:[%s854_s1 + $0x8] sm:$0xff] (!%p216_p9)   ;;  %v585_v3 = vld [vmem:[%s854_s1 + $0x10] sm:$0xff] (!%p216_p9)   ;;  %vm364_vm0 = vcmask (!%p216_p9), 523264   ;;  %v279_v17 = vlaneseq (!%p216_p9) }
   0xe   : > { %219 = sbr.rel (%p216_p9) target bundleno = 605 (0x25d), region = 44  ;;  %368 = vmatprep.subr.bf16.mxu0 (!%p216_p9), %v661_v1  ;;  %v586_v4 = vld [vmem:[%s854_s1 + $0x18] sm:$0xff] (!%p216_p9)   ;;  %v587_v7 = vld [vmem:[%s854_s1 + $0x20] sm:$0xff] (!%p216_p9)   ;;  %v588_v8 = vld [vmem:[%s854_s1 + $0x28] sm:$0xff] (!%p216_p9)   ;;  %vm412_vm2 = vcmask (!%p216_p9), 261120   ;;  %s539_s18 = sshll.u32 (!%p216_p9), %s719_s25, 7 }
   0xf   : > { %369 = vmatpush1.bf16.msra.mxu0 (!%p216_p9), %v583_v0  ;;  %v589_v9 = vld [vmem:[%s854_s1 + $0x30] sm:$0xff] (!%p216_p9)   ;;  %v590_v10 = vld [vmem:[%s854_s1 + $0x38] sm:$0xff] (!%p216_p9)   ;;  %v591_v11 = vld [vmem:[%s854_s1 + $0x40] sm:$0xff] (!%p216_p9)   ;;  %v280_v18 = vshrl.u32 (!%p216_p9), %v279_v17, 7  ;;  %s810_s9 = scalar_lea.hbm (!%p216_p9), %s859_s6, %s539_s18 }
  0x10   : > { %370 = vmatprep.subr.bf16.mxu0 (!%p216_p9), %v661_v1  ;;  %v592_v12 = vld [vmem:[%s854_s1 + $0x48] sm:$0xff] (!%p216_p9)   ;;  %v593_v13 = vld [vmem:[%s854_s1 + $0x50] sm:$0xff] (!%p216_p9)   ;;  %v594_v14 = vld [vmem:[%s854_s1 + $0x58] sm:$0xff] (!%p216_p9)  }
  0x11   : > { %vm281_vm1 = vcmp.eq.s32.totalorder (!%p216_p9), %v280_v18, 0  ;;  %v522_v19 = vld [vmem:[%s855_s2] ss:$0 sm:$0xff] (!%p216_p9) }
  0x12   : > { %v291_v20 = vsel (!%p216_p9), %vm281_vm1, %v522_v19, 0.0  ;;  %v408_v22 = vld [vmem:[%s856_s3] sm:$0xff] (!%p216_p9) }
  0x13   : > { %371 = vmatpush1.bf16.msra.mxu0 (!%p216_p9), %v584_v2  ;;  %v536_v38 = vld [vmem:[%s857_s4] ss:$0 sm:$0xff] (!%p216_p9) }
  0x14   : > { %372 = vmatprep.subr.bf16.mxu0 (!%p216_p9), %v661_v1  ;;  %v537_v40 = vld [vmem:[%s858_s5] ss:$0 sm:$0xff] (!%p216_p9) }
  0x15   : > { %s246_s13 = scalar_select %p245_p10, %s719_s25, 1 }
  0x16   : > { %s662_s25 = smov [#allocation2]  }
  0x17   : > { %s542_s16 = sshll.u32 %s246_s13, 4  ;;  %373 = vmatpush1.bf16.msra.mxu0 %v585_v3  ;;  %s601_s12 = sshll.u32 %s662_s25, 4  ;;  %s602_s12 = int_to_ptr.vmem [resolvable:$false] %s601_s12 }
  0x18   : > { %s760_s19 = scalar_lea.vmem %s853_s0, %s542_s16  ;;  %374 = vmatprep.subr.bf16.mxu0 %v661_v1 }
  0x19   : > { %v252_v5 = vld [vmem:[%s760_s19 + $0x8] sm:$0xff]  ;;  %v251_v15 = vld [vmem:[%s760_s19] sm:$0xff]  ;;  %s242_s19 = sand.u32 1, %s651_s22  }
  0x1a   : > { %v254_v6 = vpack.c.bf16 %v252_v5, %v252_v5  ;;  %v253_v16 = vpack.c.bf16 %v251_v15, %v251_v15  ;;  %s519_s13 = sshll.u32 %s242_s19, 3  ;;  %s443_s10 = scalar_lea.sflag [#allocation3], %s242_s19 }
  0x1b   : > { %375 = vmatpush1.bf16.msra.mxu0 %v586_v4  ;;  %s244_s20 = scalar_lea.vmem [#allocation2], %s519_s13  ;;  %s603_s13 = scalar_lea.vmem %s602_s12, 256 }
  0x1c   : > { %376 = vmatprep.subr.bf16.mxu0 %v661_v1  ;;  %535 = vmatprep.mubr.msk.bf16.mxu0 %vm364_vm0, %v254_v6  ;;  %s456_s26 = sshll.u32 %s244_s20, 4  ;;  %s812_s26 = int_to_ptr.vmem [resolvable:$true] %s456_s26 }
  0x1d   : > { %s597_s11 = scalar_lea.vmem %s812_s26, 128  ;;  %p604_p0 = scmp.lt.s32.totalorder %s812_s26, %s602_s12 }
  0x1e   : > { %p598_p11 = scmp.ne.s32.totalorder %s812_s26, %s597_s11  ;;  %p605_p1 = scmp.lt.s32.totalorder %s603_s13, %s597_s11 }
  0x1f   : > { %377 = vmatpush1.bf16.msra.mxu0 %v587_v7 }
  0x20   : > { %378 = vmatprep.subr.bf16.mxu0 %v661_v1  ;;  %p599_p12 = pnand %p598_p11, %p736_p5  ;;  %p606_p2 = por %p605_p1, %p604_p0 }
  0x22   : > { %p600_p13 = pneg %p599_p12 }
  0x23   : > { %379 = vmatpush1.bf16.msra.mxu0 %v588_v8 }
  0x24   : > { %380 = vmatprep.subr.bf16.mxu0 %v661_v1  ;;  %p607_p3 = pnand %p606_p2, %p600_p13 }
  0x27   : > { %381 = vmatpush1.bf16.msra.mxu0 %v589_v9 }
  0x28   : > { %382 = vmatprep.subr.bf16.mxu0 %v661_v1 }
  0x2b   : > { %383 = vmatpush1.bf16.msra.mxu0 %v590_v10 }
  0x2c   : > { %384 = vmatprep.subr.bf16.mxu0 %v661_v1 }
  0x2f   : > { %385 = vmatpush1.bf16.msra.mxu0 %v591_v11 }
  0x30   : > { %386 = vmatprep.subr.bf16.mxu0 %v661_v1 }
  0x33   : > { %387 = vmatpush1.bf16.msra.mxu0 %v592_v12 }
  0x34   : > { %388 = vmatprep.subr.bf16.mxu0 %v661_v1 }
  0x37   : > { %389 = vmatpush1.bf16.msra.mxu0 %v593_v13 }
  0x38   : > { %390 = vmatprep.subr.bf16.mxu0 %v661_v1 }
  0x3b   : > { %391 = vmatpush1.bf16.msra.mxu0 %v594_v14 }
  0x3e   : > { %401 = vmatmul.mubr.bf16.vlgmr.msra.gmra.mrb[0].mxu0 %v253_v16 }
 0x111   : > { %v402_v21 = vpop.f32.mrb[0].mxu0 }
 0x112   : > { %v403_v23 = vadd.f32 %v402_v21, %v291_v20  ;;  %v404_v24 = vpop.f32.mrb[1].mxu0 }
 0x113   : > { %v405_v25 = vpop.f32.mrb[2].mxu0 }
 0x114   : > { %v406_v26 = vpop.f32.mrb[3].mxu0  ;;  %v409_v27 = vadd.f32 %v408_v22, %v403_v23 }
 0x116   : > { %v413_v28 = vsel %vm412_vm2, %v409_v27, 0.0 }
 0x117   : > { %414 = vadd.xlane.f32.xlu0 %v413_v28 }
 0x1a4   : > { %v415_v29 = vpop.xlane.xlu0 %414 }
 0x1a5   : > { %v417_v30 = vmul.f32 0.03125, %v415_v29 }
 0x1a7   : > { %v418_v31 = vsub.f32 %v409_v27, %v417_v30 }
 0x1a9   : > { %v419_v32 = vmul.f32 %v418_v31, %v418_v31 }
 0x1ab   : > { %v420_v33 = vsel %vm412_vm2, %v419_v32, 0.0 }
 0x1ac   : > { %421 = vadd.xlane.f32.xlu0 %v420_v33 }
 0x239   : > { %v422_v34 = vpop.xlane.xlu0 %421 }
 0x23a   : > { %v423_v35 = vmul.f32 0.03125, %v422_v34 }
 0x23c   : > { %v424_v36 = vadd.f32 1e-05, %v423_v35 }
 0x23e   : > { %595 = vrsqrt.f32 %v424_v36 }
 0x248   : > { %v596_v37 = vpop.eup %595 }
 0x249   : > { %v426_v39 = vmul.f32 %v596_v37, %v418_v31 }
 0x24b   : > { %v433_v41 = vmul.f32 %v536_v38, %v426_v39 }
 0x24d   : > { %v440_v42 = vadd.f32 %v537_v40, %v433_v41 }
 0x24f   : > { %441 = vst.msk [vmem:[%s244_s20] sm:$0xff] %vm412_vm2, %v440_v42 }
 0x250   : > { %610 = shalt.err (!%p607_p3)
}
 0x251   : > { %s611_s19 = scalar_lea.hbm %s810_s9, 128  ;;  %s615_s16 = scalar_lea.hbm %s859_s6, 256 }
 0x252   : > { %p612_p4 = scmp.ne.s32.totalorder %s810_s9, %s611_s19  ;;  %p616_p9 = scmp.lt.u32.totalorder %s810_s9, %s859_s6 }
 0x253   : > { %p617_p10 = scmp.lt.u32.totalorder %s615_s16, %s611_s19  ;;  %p619_p12 = scmp.lt.u32.totalorder %s611_s19, %s810_s9 }
 0x254   : > { %p613_p7 = pnand %p612_p4, %p736_p5 }
 0x255   : > { %p618_p11 = por %p617_p10, %p616_p9 }
 0x256   : > { %p614_p8 = pneg %p613_p7 }
 0x257   : > { %p620_p13 = por %p619_p12, %p618_p11 }
 0x259   : > { %p621_p0 = pnand %p620_p13, %p614_p8 }
 0x25b   : > { %624 = shalt.err (!%p621_p0)
}
 0x25c   : > { %543 = dma.vmem_to_hbm [thread:$0]  (%p736_p5), %s812_s26, 128, %s810_s9, %s443_s10  }
 0x25d PF: > { %p549_p1 = scmp.ge.s32.totalorder %s659_s24, 2  ;;  %s468_s20 = sand.u32 1, %s647_s21  }
 0x25e   : > { %s469_s28 = scalar_lea.sflag [#allocation3], %s468_s20 }
 0x25f   : > { %p546_p2 = pnand %p549_p1, %p740_p6 }
 0x261   : > { %642 = dma.done.wait (!%p546_p2), %s469_s28, 128  }
 0x262   : > { %644 = vsyncadd (!%p546_p2), %s469_s28, 4294967168  ;;  %p16_p3 = scmp.ge.s32.totalorder %s723_s27, 4   ;;  %s862_s21 = smov %s651_s22 }
 0x263   : > { %s863_s22 = smov %s655_s23  ;;  %s864_s23 = smov %s734_s30 }
 0x264   : > { %s865_s24 = smov %s723_s27  ;;  %18 = sbr.rel (!%p16_p3) target bundleno = 3 (0x3), region = 79 }
 0x26b   :  { %474 = vsyncpa [#allocation3], 1 }
 0x26c   :  { %476 = vsyncpa [#allocation3 + $0x1], 1 }

</bundles_post_ra>
